<compile_context>
chip_gen: v7x
topology: tpu7x:2x2x1
jax: 0.10.0
libtpu: 0.0.40
codegen_flags: <defaults>
</compile_context>

<pallas_src>
import jax
import jax.numpy as jnp
from jax.experimental import pallas as pl
from jax.experimental.pallas import tpu as pltpu


def _ncf_mlp_kernel(u_ref, i_ref,
                    w1u_ref, w1i_ref, b1_ref,
                    w2_ref, b2_ref,
                    w3_ref, b3_ref,
                    w4_ref, b4_ref,
                    wp_ref, bp_ref,
                    o_ref):
    # Activations: (features, TILE_B) -- batch on the 128-lane axis.
    # Weights: (out_features, in_features) (PyTorch layout), bf16.
    # Biases:  (out_features, 1) f32, lane-broadcast.
    f32 = jnp.float32
    bf16 = jnp.bfloat16

    # Layer 1: relu(W1 @ concat(u, i) + b1) expressed as two accumulated dots.
    h = (jnp.dot(w1u_ref[...], u_ref[...], preferred_element_type=f32)
         + jnp.dot(w1i_ref[...], i_ref[...], preferred_element_type=f32)
         + b1_ref[...])
    h = jnp.maximum(h, 0.0).astype(bf16)                                 # (D,   TB)

    h = jnp.dot(w2_ref[...], h, preferred_element_type=f32) + b2_ref[...]
    h = jnp.maximum(h, 0.0).astype(bf16)                                 # (D/2, TB)

    h = jnp.dot(w3_ref[...], h, preferred_element_type=f32) + b3_ref[...]
    h = jnp.maximum(h, 0.0).astype(bf16)                                 # (D/4, TB)

    h = jnp.dot(w4_ref[...], h, preferred_element_type=f32) + b4_ref[...]
    h = jnp.maximum(h, 0.0).astype(bf16)                                 # (D/8, TB)

    logit = jnp.dot(wp_ref[...], h, preferred_element_type=f32) + bp_ref[...]  # (1, TB)
    # sigmoid: exp -> EUP, approx reciprocal -> EUP (VALU stays free).
    o_ref[...] = pl.reciprocal(1.0 + jnp.exp(-logit), approx=True)


def ncf_mlp_forward(user_idx, item_idx, params, *, tile_b=512):
    D = params["user_emb"].shape[1]
    B = user_idx.shape[0]
    bf16 = jnp.bfloat16

    # --- glue: embedding gather, bf16 cast, transpose to (feature, batch), pad.
    u = jnp.take(params["user_emb"], user_idx, axis=0).astype(bf16).T    # (D, B)
    i = jnp.take(params["item_emb"], item_idx, axis=0).astype(bf16).T    # (D, B)

    # Tile the batch on the lane axis; keep the tile a multiple of 128.
    tile_b = max(128, min(tile_b, ((B + 127) // 128) * 128))
    n_tiles = pl.cdiv(B, tile_b)
    b_pad = n_tiles * tile_b
    if b_pad != B:
        u = jnp.pad(u, ((0, 0), (0, b_pad - B)))
        i = jnp.pad(i, ((0, 0), (0, b_pad - B)))

    # Weights (out, in) -> bf16; split W1 into user/item halves (kills concat).
    w1 = params["w1"].astype(bf16)
    w1u, w1i = w1[:, :D], w1[:, D:]
    w2 = params["w2"].astype(bf16)
    w3 = params["w3"].astype(bf16)
    w4 = params["w4"].astype(bf16)
    wp = params["wp"].astype(bf16)
    # Biases as (out, 1) f32 columns: broadcast along the lane (batch) axis.
    b1 = params["b1"].reshape(-1, 1)
    b2 = params["b2"].reshape(-1, 1)
    b3 = params["b3"].reshape(-1, 1)
    b4 = params["b4"].reshape(-1, 1)
    bp = params["bp"].reshape(-1, 1)

    def act_spec(rows):
        # (features, TILE_B) tile marching along the batch (lane) axis.
        return pl.BlockSpec((rows, tile_b), lambda b: (0, b))

    def resident(arr):
        # Full-array block, constant index map: stays in VMEM across all tiles.
        return pl.BlockSpec(arr.shape, lambda b: (0, 0))

    in_specs = [
        act_spec(D), act_spec(D),
        resident(w1u), resident(w1i), resident(b1),
        resident(w2), resident(b2),
        resident(w3), resident(b3),
        resident(w4), resident(b4),
        resident(wp), resident(bp),
    ]

    out = pl.pallas_call(
        _ncf_mlp_kernel,
        out_shape=jax.ShapeDtypeStruct((1, b_pad), jnp.float32),
        grid=(n_tiles,),
        in_specs=in_specs,
        out_specs=pl.BlockSpec((1, tile_b), lambda b: (0, b)),
        compiler_params=pltpu.CompilerParams(
            dimension_semantics=("parallel",),      # megacore split on v7x
            vmem_limit_bytes=32 * 1024 * 1024,      # safe on v5e/v6e/v7x
        ),
    )(u, i, w1u, w1i, b1, w2, b2, w3, b3, w4, b4, wp, bp)

    return out[0, :B].reshape(B, 1)


def _xavier_uniform(key, out_features, in_features):
    limit = jnp.sqrt(6.0 / (in_features + out_features))
    return jax.random.uniform(key, (out_features, in_features), jnp.float32,
                              -limit, limit)


def init_params(key, num_users, num_items, latent_dim):
    D = latent_dim
    ks = jax.random.split(key, 8)
    # Embeddings ~ N(0, 0.01); Linear weights xavier (out, in); biases zero.
    return {
        "user_emb": 0.01 * jax.random.normal(ks[0], (num_users, D), jnp.float32),
        "item_emb": 0.01 * jax.random.normal(ks[1], (num_items, D), jnp.float32),
        "w1": _xavier_uniform(ks[2], D, 2 * D),       "b1": jnp.zeros((D,), jnp.float32),
        "w2": _xavier_uniform(ks[3], D // 2, D),      "b2": jnp.zeros((D // 2,), jnp.float32),
        "w3": _xavier_uniform(ks[4], D // 4, D // 2), "b3": jnp.zeros((D // 4,), jnp.float32),
        "w4": _xavier_uniform(ks[5], D // 8, D // 4), "b4": jnp.zeros((D // 8,), jnp.float32),
        "wp": _xavier_uniform(ks[6], 1, D // 8),      "bp": jnp.zeros((1,), jnp.float32),
    }


def _reference_forward(user_idx, item_idx, p):
    u = jnp.take(p["user_emb"], user_idx, axis=0)
    v = jnp.take(p["item_emb"], item_idx, axis=0)
    h = jnp.concatenate([u, v], axis=-1)
    h = jax.nn.relu(h @ p["w1"].T + p["b1"])
    h = jax.nn.relu(h @ p["w2"].T + p["b2"])
    h = jax.nn.relu(h @ p["w3"].T + p["b3"])
    h = jax.nn.relu(h @ p["w4"].T + p["b4"])
    return jax.nn.sigmoid(h @ p["wp"].T + p["bp"])


if __name__ == "__main__":
    num_users, num_items, latent_dim = 100, 200, 32
    batch = 8

    key = jax.random.PRNGKey(0)
    k_param, k_user, k_item = jax.random.split(key, 3)

    params = init_params(k_param, num_users, num_items, latent_dim)
    user_idx = jax.random.randint(k_user, (batch,), 0, num_users)
    item_idx = jax.random.randint(k_item, (batch,), 0, num_items)

    rating = ncf_mlp_forward(user_idx, item_idx, params)
    jax.block_until_ready(rating)

    ref = _reference_forward(user_idx, item_idx, params)
    assert rating.shape == (batch, 1)
    # bf16 matmuls + approx reciprocal -> slightly looser tolerance than f32.
    assert jnp.allclose(rating, ref, atol=1e-2, rtol=1e-2), (rating, ref)

    print("KERNEL_OK")
</pallas_src>

<mosaic_0001>
module attributes {stable_mosaic.version = 11 : i64} {
  func.func @_ncf_mlp_kernel(%arg0: i32, %arg1: memref<32x128xbf16, #tpu.memory_space<vmem>>, %arg2: memref<32x128xbf16, #tpu.memory_space<vmem>>, %arg3: memref<32x32xbf16, #tpu.memory_space<vmem>>, %arg4: memref<32x32xbf16, #tpu.memory_space<vmem>>, %arg5: memref<32x1xf32, #tpu.memory_space<vmem>>, %arg6: memref<16x32xbf16, #tpu.memory_space<vmem>>, %arg7: memref<16x1xf32, #tpu.memory_space<vmem>>, %arg8: memref<8x16xbf16, #tpu.memory_space<vmem>>, %arg9: memref<8x1xf32, #tpu.memory_space<vmem>>, %arg10: memref<4x8xbf16, #tpu.memory_space<vmem>>, %arg11: memref<4x1xf32, #tpu.memory_space<vmem>>, %arg12: memref<1x4xbf16, #tpu.memory_space<vmem>>, %arg13: memref<1x1xf32, #tpu.memory_space<vmem>>, %arg14: memref<1x128xf32, #tpu.memory_space<vmem>>) attributes {dimension_semantics = [#tpu.dimension_semantics<parallel>], iteration_bounds = array<i64: 1>, scalar_prefetch = 0 : i64, scratch_operands = 0 : i64, tpu.core_type = #tpu.core_type<tc>, window_params = [{transform_indices = @transform_0, window_bounds = array<i64: 32, 128>}, {transform_indices = @transform_1, window_bounds = array<i64: 32, 128>}, {pipeline_mode = #tpu.pipeline_mode<synchronous>, transform_indices = @transform_2, window_bounds = array<i64: 32, 32>}, {pipeline_mode = #tpu.pipeline_mode<synchronous>, transform_indices = @transform_3, window_bounds = array<i64: 32, 32>}, {pipeline_mode = #tpu.pipeline_mode<synchronous>, transform_indices = @transform_4, window_bounds = array<i64: 32, 1>}, {pipeline_mode = #tpu.pipeline_mode<synchronous>, transform_indices = @transform_5, window_bounds = array<i64: 16, 32>}, {pipeline_mode = #tpu.pipeline_mode<synchronous>, transform_indices = @transform_6, window_bounds = array<i64: 16, 1>}, {pipeline_mode = #tpu.pipeline_mode<synchronous>, transform_indices = @transform_7, window_bounds = array<i64: 8, 16>}, {pipeline_mode = #tpu.pipeline_mode<synchronous>, transform_indices = @transform_8, window_bounds = array<i64: 8, 1>}, {pipeline_mode = #tpu.pipeline_mode<synchronous>, transform_indices = @transform_9, window_bounds = array<i64: 4, 8>}, {pipeline_mode = #tpu.pipeline_mode<synchronous>, transform_indices = @transform_10, window_bounds = array<i64: 4, 1>}, {pipeline_mode = #tpu.pipeline_mode<synchronous>, transform_indices = @transform_11, window_bounds = array<i64: 1, 4>}, {pipeline_mode = #tpu.pipeline_mode<synchronous>, transform_indices = @transform_12, window_bounds = array<i64: 1, 1>}, {transform_indices = @transform_13, window_bounds = array<i64: 1, 128>}]} {
    %c0 = arith.constant 0 : index
    %c0_0 = arith.constant 0 : index
    %0 = vector.load %arg3[%c0, %c0_0] : memref<32x32xbf16, #tpu.memory_space<vmem>>, vector<32x32xbf16>
    %c0_1 = arith.constant 0 : index
    %c0_2 = arith.constant 0 : index
    %1 = vector.load %arg1[%c0_1, %c0_2] : memref<32x128xbf16, #tpu.memory_space<vmem>>, vector<32x128xbf16>
    %cst = arith.constant dense<0.000000e+00> : vector<32x128xf32>
    %2 = tpu.matmul %0, %1, %cst {dimension_numbers = #tpu.dot_dimension_numbers<[1], [0], [0], [1], [0, 0, 1, 1], [], []>} : vector<32x32xbf16>, vector<32x128xbf16>, vector<32x128xf32> -> vector<32x128xf32>
    %c0_3 = arith.constant 0 : index
    %c0_4 = arith.constant 0 : index
    %3 = vector.load %arg4[%c0_3, %c0_4] : memref<32x32xbf16, #tpu.memory_space<vmem>>, vector<32x32xbf16>
    %c0_5 = arith.constant 0 : index
    %c0_6 = arith.constant 0 : index
    %4 = vector.load %arg2[%c0_5, %c0_6] : memref<32x128xbf16, #tpu.memory_space<vmem>>, vector<32x128xbf16>
    %cst_7 = arith.constant dense<0.000000e+00> : vector<32x128xf32>
    %5 = tpu.matmul %3, %4, %cst_7 {dimension_numbers = #tpu.dot_dimension_numbers<[1], [0], [0], [1], [0, 0, 1, 1], [], []>} : vector<32x32xbf16>, vector<32x128xbf16>, vector<32x128xf32> -> vector<32x128xf32>
    %6 = arith.addf %2, %5 : vector<32x128xf32>
    %c0_8 = arith.constant 0 : index
    %c0_9 = arith.constant 0 : index
    %7 = vector.load %arg5[%c0_8, %c0_9] : memref<32x1xf32, #tpu.memory_space<vmem>>, vector<32x1xf32>
    %8 = vector.broadcast %7 : vector<32x1xf32> to vector<32x128xf32>
    %9 = arith.addf %6, %8 : vector<32x128xf32>
    %cst_10 = arith.constant 0.000000e+00 : f32
    %10 = vector.broadcast %cst_10 : f32 to vector<32x128xf32>
    %11 = arith.maximumf %9, %10 : vector<32x128xf32>
    %12 = arith.truncf %11 : vector<32x128xf32> to vector<32x128xbf16>
    %c0_11 = arith.constant 0 : index
    %c0_12 = arith.constant 0 : index
    %13 = vector.load %arg6[%c0_11, %c0_12] : memref<16x32xbf16, #tpu.memory_space<vmem>>, vector<16x32xbf16>
    %cst_13 = arith.constant dense<0.000000e+00> : vector<16x128xf32>
    %14 = tpu.matmul %13, %12, %cst_13 {dimension_numbers = #tpu.dot_dimension_numbers<[1], [0], [0], [1], [0, 0, 1, 1], [], []>} : vector<16x32xbf16>, vector<32x128xbf16>, vector<16x128xf32> -> vector<16x128xf32>
    %c0_14 = arith.constant 0 : index
    %c0_15 = arith.constant 0 : index
    %15 = vector.load %arg7[%c0_14, %c0_15] : memref<16x1xf32, #tpu.memory_space<vmem>>, vector<16x1xf32>
    %16 = vector.broadcast %15 : vector<16x1xf32> to vector<16x128xf32>
    %17 = arith.addf %14, %16 : vector<16x128xf32>
    %cst_16 = arith.constant 0.000000e+00 : f32
    %18 = vector.broadcast %cst_16 : f32 to vector<16x128xf32>
    %19 = arith.maximumf %17, %18 : vector<16x128xf32>
    %20 = arith.truncf %19 : vector<16x128xf32> to vector<16x128xbf16>
    %c0_17 = arith.constant 0 : index
    %c0_18 = arith.constant 0 : index
    %21 = vector.load %arg8[%c0_17, %c0_18] : memref<8x16xbf16, #tpu.memory_space<vmem>>, vector<8x16xbf16>
    %cst_19 = arith.constant dense<0.000000e+00> : vector<8x128xf32>
    %22 = tpu.matmul %21, %20, %cst_19 {dimension_numbers = #tpu.dot_dimension_numbers<[1], [0], [0], [1], [0, 0, 1, 1], [], []>} : vector<8x16xbf16>, vector<16x128xbf16>, vector<8x128xf32> -> vector<8x128xf32>
    %c0_20 = arith.constant 0 : index
    %c0_21 = arith.constant 0 : index
    %23 = vector.load %arg9[%c0_20, %c0_21] : memref<8x1xf32, #tpu.memory_space<vmem>>, vector<8x1xf32>
    %24 = vector.broadcast %23 : vector<8x1xf32> to vector<8x128xf32>
    %25 = arith.addf %22, %24 : vector<8x128xf32>
    %cst_22 = arith.constant 0.000000e+00 : f32
    %26 = vector.broadcast %cst_22 : f32 to vector<8x128xf32>
    %27 = arith.maximumf %25, %26 : vector<8x128xf32>
    %28 = arith.truncf %27 : vector<8x128xf32> to vector<8x128xbf16>
    %c0_23 = arith.constant 0 : index
    %c0_24 = arith.constant 0 : index
    %29 = vector.load %arg10[%c0_23, %c0_24] : memref<4x8xbf16, #tpu.memory_space<vmem>>, vector<4x8xbf16>
    %cst_25 = arith.constant dense<0.000000e+00> : vector<4x128xf32>
    %30 = tpu.matmul %29, %28, %cst_25 {dimension_numbers = #tpu.dot_dimension_numbers<[1], [0], [0], [1], [0, 0, 1, 1], [], []>} : vector<4x8xbf16>, vector<8x128xbf16>, vector<4x128xf32> -> vector<4x128xf32>
    %c0_26 = arith.constant 0 : index
    %c0_27 = arith.constant 0 : index
    %31 = vector.load %arg11[%c0_26, %c0_27] : memref<4x1xf32, #tpu.memory_space<vmem>>, vector<4x1xf32>
    %32 = vector.broadcast %31 : vector<4x1xf32> to vector<4x128xf32>
    %33 = arith.addf %30, %32 : vector<4x128xf32>
    %cst_28 = arith.constant 0.000000e+00 : f32
    %34 = vector.broadcast %cst_28 : f32 to vector<4x128xf32>
    %35 = arith.maximumf %33, %34 : vector<4x128xf32>
    %36 = arith.truncf %35 : vector<4x128xf32> to vector<4x128xbf16>
    %c0_29 = arith.constant 0 : index
    %c0_30 = arith.constant 0 : index
    %37 = vector.load %arg12[%c0_29, %c0_30] : memref<1x4xbf16, #tpu.memory_space<vmem>>, vector<1x4xbf16>
    %cst_31 = arith.constant dense<0.000000e+00> : vector<1x128xf32>
    %38 = tpu.matmul %37, %36, %cst_31 {dimension_numbers = #tpu.dot_dimension_numbers<[1], [0], [0], [1], [0, 0, 1, 1], [], []>} : vector<1x4xbf16>, vector<4x128xbf16>, vector<1x128xf32> -> vector<1x128xf32>
    %c0_32 = arith.constant 0 : index
    %c0_33 = arith.constant 0 : index
    %39 = vector.load %arg13[%c0_32, %c0_33] : memref<1x1xf32, #tpu.memory_space<vmem>>, vector<1x1xf32>
    %40 = vector.broadcast %39 : vector<1x1xf32> to vector<1x128xf32>
    %41 = arith.addf %38, %40 : vector<1x128xf32>
    %cst_34 = arith.constant 0.000000e+00 : f32
    %42 = vector.broadcast %cst_34 : f32 to vector<1x128xf32>
    %43 = arith.subf %42, %41 : vector<1x128xf32>
    %44 = math.exp %43 : vector<1x128xf32>
    %cst_35 = arith.constant 1.000000e+00 : f32
    %45 = vector.broadcast %cst_35 : f32 to vector<1x128xf32>
    %46 = arith.addf %45, %44 : vector<1x128xf32>
    %47 = tpu.reciprocal %46 {approx = true} : vector<1x128xf32> -> vector<1x128xf32>
    %c0_36 = arith.constant 0 : index
    %c0_37 = arith.constant 0 : index
    %48 = vector.load %arg14[%c0_36, %c0_37] : memref<1x128xf32, #tpu.memory_space<vmem>>, vector<1x128xf32>
    tpu.vector_store %arg14[%c0_36, %c0_37], %47 {strides = array<i32>} : memref<1x128xf32, #tpu.memory_space<vmem>>, vector<1x128xf32>,
    return
  }
  func.func @transform_0(%arg0: i32) -> (i32, i32) {
    %c0_i32 = arith.constant 0 : i32
    %c0_i32_0 = arith.constant 0 : i32
    return %c0_i32, %arg0 : i32, i32
  }
  func.func @transform_1(%arg0: i32) -> (i32, i32) {
    %c0_i32 = arith.constant 0 : i32
    %c0_i32_0 = arith.constant 0 : i32
    return %c0_i32, %arg0 : i32, i32
  }
  func.func @transform_2(%arg0: i32) -> (i32, i32) {
    %c0_i32 = arith.constant 0 : i32
    %c0_i32_0 = arith.constant 0 : i32
    %c0_i32_1 = arith.constant 0 : i32
    return %c0_i32, %c0_i32_0 : i32, i32
  }
  func.func @transform_3(%arg0: i32) -> (i32, i32) {
    %c0_i32 = arith.constant 0 : i32
    %c0_i32_0 = arith.constant 0 : i32
    %c0_i32_1 = arith.constant 0 : i32
    return %c0_i32, %c0_i32_0 : i32, i32
  }
  func.func @transform_4(%arg0: i32) -> (i32, i32) {
    %c0_i32 = arith.constant 0 : i32
    %c0_i32_0 = arith.constant 0 : i32
    %c0_i32_1 = arith.constant 0 : i32
    return %c0_i32, %c0_i32_0 : i32, i32
  }
  func.func @transform_5(%arg0: i32) -> (i32, i32) {
    %c0_i32 = arith.constant 0 : i32
    %c0_i32_0 = arith.constant 0 : i32
    %c0_i32_1 = arith.constant 0 : i32
    return %c0_i32, %c0_i32_0 : i32, i32
  }
  func.func @transform_6(%arg0: i32) -> (i32, i32) {
    %c0_i32 = arith.constant 0 : i32
    %c0_i32_0 = arith.constant 0 : i32
    %c0_i32_1 = arith.constant 0 : i32
    return %c0_i32, %c0_i32_0 : i32, i32
  }
  func.func @transform_7(%arg0: i32) -> (i32, i32) {
    %c0_i32 = arith.constant 0 : i32
    %c0_i32_0 = arith.constant 0 : i32
    %c0_i32_1 = arith.constant 0 : i32
    return %c0_i32, %c0_i32_0 : i32, i32
  }
  func.func @transform_8(%arg0: i32) -> (i32, i32) {
    %c0_i32 = arith.constant 0 : i32
    %c0_i32_0 = arith.constant 0 : i32
    %c0_i32_1 = arith.constant 0 : i32
    return %c0_i32, %c0_i32_0 : i32, i32
  }
  func.func @transform_9(%arg0: i32) -> (i32, i32) {
    %c0_i32 = arith.constant 0 : i32
    %c0_i32_0 = arith.constant 0 : i32
    %c0_i32_1 = arith.constant 0 : i32
    return %c0_i32, %c0_i32_0 : i32, i32
  }
  func.func @transform_10(%arg0: i32) -> (i32, i32) {
    %c0_i32 = arith.constant 0 : i32
    %c0_i32_0 = arith.constant 0 : i32
    %c0_i32_1 = arith.constant 0 : i32
    return %c0_i32, %c0_i32_0 : i32, i32
  }
  func.func @transform_11(%arg0: i32) -> (i32, i32) {
    %c0_i32 = arith.constant 0 : i32
    %c0_i32_0 = arith.constant 0 : i32
    %c0_i32_1 = arith.constant 0 : i32
    return %c0_i32, %c0_i32_0 : i32, i32
  }
  func.func @transform_12(%arg0: i32) -> (i32, i32) {
    %c0_i32 = arith.constant 0 : i32
    %c0_i32_0 = arith.constant 0 : i32
    %c0_i32_1 = arith.constant 0 : i32
    return %c0_i32, %c0_i32_0 : i32, i32
  }
  func.func @transform_13(%arg0: i32) -> (i32, i32) {
    %c0_i32 = arith.constant 0 : i32
    %c0_i32_0 = arith.constant 0 : i32
    return %c0_i32, %arg0 : i32, i32
  }
}

</mosaic_0001>

<bundles_post_ra>
// kernel: tpu_custom_call.1
= control target key start
LH: loop header
LB: loop body
LE: loop exit
PB: predicated region body
PF: predicated region fallthrough
CT: control target
= control target key end

     0   :  { %s789_s0 = inlined_call_operand.vmem [shape: bf16[32,128], index: 0, kind: input, shape index: {}]   ;;  %s790_s1 = inlined_call_operand.vmem [shape: bf16[32,128], index: 1, kind: input, shape index: {}]   ;;  %s791_s2 = inlined_call_operand.vmem [shape: bf16[32,32], index: 2, kind: input, shape index: {}]   ;;  %s792_s3 = inlined_call_operand.vmem [shape: bf16[32,32], index: 3, kind: input, shape index: {}]   ;;  %s793_s4 = inlined_call_operand.vmem [shape: f32[32,1], index: 4, kind: input, shape index: {}]   ;;  %s794_s5 = inlined_call_operand.vmem [shape: bf16[16,32], index: 5, kind: input, shape index: {}]   ;;  %s795_s6 = inlined_call_operand.vmem [shape: f32[16,1], index: 6, kind: input, shape index: {}]   ;;  %s796_s7 = inlined_call_operand.vmem [shape: bf16[8,16], index: 7, kind: input, shape index: {}]   ;;  %s797_s8 = inlined_call_operand.vmem [shape: f32[8,1], index: 8, kind: input, shape index: {}]   ;;  %s798_s9 = inlined_call_operand.vmem [shape: bf16[4,8], index: 9, kind: input, shape index: {}]   ;;  %s799_s10 = inlined_call_operand.vmem [shape: f32[4,1], index: 10, kind: input, shape index: {}]   ;;  %s800_s11 = inlined_call_operand.vmem [shape: bf16[1,4], index: 11, kind: input, shape index: {}]   ;;  %s801_s12 = inlined_call_operand.<no memory space> [shape: f32[1,1], index: 12, kind: input, shape index: {}]   ;;  %s802_s13 = inlined_call_operand.hbm [shape: f32[1,128], index: 13, kind: output, shape index: {}]  }
   0x1   :  { %v18_v0 = vstv %s801_s12 }
   0x2   :  { %19 = vst [vmem:[#allocation2] sm:$0x1] %v18_v0 }
   0x3   :  { %v594_v1 = vld [vmem:[%s790_s1] sm:$0xff]   ;;  %vm86_vm0 = vcmask 261120   ;;  %v595_v2 = vld [vmem:[%s790_s1 + $0x8] sm:$0xff]   ;;  %v631_v4 = vmov 0   ;;  %v221_v10 = vld [vmem:[%s793_s4 + $0x10] sm:$0xff] }
   0x4   :  { %542 = vmatprep.subr.bf16.mxu0 %v594_v1  ;;  %v596_v3 = vld [vmem:[%s792_s3] sm:$0xff]   ;;  %592 = vset.pattern.permute.xlu0 %v631_v4  ;;  %v597_v6 = vld [vmem:[%s792_s3 + $0x8] sm:$0xff]   ;;  %v222_v12 = vld [vmem:[%s793_s4 + $0x18] sm:$0xff] }
   0x5   :  { %543 = vmatpush3.bf16.msra.mxu0 %v594_v1  ;;  %593 = vset.pattern.permute.xlu1 %v631_v4  ;;  %v598_v5 = vld [vmem:[%s789_s0] sm:$0xff]   ;;  %v599_v8 = vld [vmem:[%s789_s0 + $0x8] sm:$0xff]  }
   0x6   :  { %544 = vmatprep.subr.bf16.mxu0 %v595_v2  ;;  %546 = vmatprep.mubr.msk.bf16.mxu0 %vm86_vm0, %v596_v3  ;;  %v600_v7 = vld [vmem:[%s791_s2] sm:$0xff]   ;;  %v220_v11 = vld [vmem:[%s793_s4 + $0x8] sm:$0xff] }
   0x7   :  { %v219_v9 = vld [vmem:[%s793_s4] sm:$0xff]  ;;  %235 = vperm.xlu1 %593, %v221_v10  }
   0x8   :  { %225 = vperm.xlu0 %592, %v219_v9  }
   0x9   :  { %545 = vmatpush3.bf16.msra.mxu0 %v595_v2 }
   0xa   :  { %550 = vmatprep.subr.bf16.mxu0 %v598_v5 }
   0xc   :  { %547 = vmatmul.mubr.msk.bf16.vlgmr.msra.gmra.mrb[0].mxu0 %vm86_vm0, %v597_v6 }
   0xd   :  { %551 = vmatpush3.bf16.msra.mxu0 %v598_v5  ;;  %554 = vmatprep.mubr.msk.bf16.mxu0 %vm86_vm0, %v600_v7 }
   0xe   :  { %20 = vsyncpa [#allocation4], 0  ;;  %552 = vmatprep.subr.bf16.mxu0 %v599_v8  ;;  %230 = vperm.xlu0 %592, %v220_v11   ;;  %v255_v13 = vld [vmem:[%s795_s6] sm:$0xff]  ;;  %v256_v14 = vld [vmem:[%s795_s6 + $0x8] sm:$0xff]  ;;  %v632_v19 = vmov 0.0   ;;  %vm633_vm1 = vmmov 0   ;;  %v436_v7 = vlaneseq }
   0xf   :  { %240 = vperm.xlu1 %593, %v222_v12   ;;  %v601_v15 = vld [vmem:[%s791_s2 + $0x8] sm:$0xff]   ;;  %v320_v16 = vld [vmem:[%s797_s8] sm:$0xff]  ;;  %558 = vmatprep.subr.bf16.mxu1 %v632_v19  ;;  %vm326_vm2 = vcmask 130048   ;;  %vm383_vm3 = vcmask 1043456   ;;  %vm379_vm4 = vcmask 64512   ;;  %vm444_vm5 = vcmask 1041408  }
  0x10   :  { %v373_v17 = vld [vmem:[%s799_s10] sm:$0xf]  ;;  %562 = vmatprep.mubr.msk.bf16.mxu1 %vm633_vm1, %v632_v19  ;;  %vm440_vm6 = vcmask 31744  }
  0x11   :  { %553 = vmatpush3.bf16.msra.mxu0 %v599_v8  ;;  %v430_v18 = vld [vmem:[#allocation2] sm:$0x1]  ;;  %v437_v8 = vshrl.u32 %v436_v7, 7 }
  0x12   :  { %259 = vperm.xlu0 %592, %v255_v13   ;;  %572 = vmatprep.subr.bf16.mxu0 %v632_v19  ;;  %v602_v38 = vld [vmem:[%s794_s5] sm:$0xff]  }
  0x13   :  { %264 = vperm.xlu1 %593, %v256_v14   ;;  %v319_v50 = vld [vmem:[%s796_s7] sm:$0xf]  ;;  %v438_v9 = vsub.s32 0, %v437_v8 }
  0x14   :  { %v372_v60 = vld [vmem:[%s798_s9] sm:$0x3]  ;;  %s634_s9 = smov [#allocation3]  }
  0x15   :  { %v429_v6 = vld [vmem:[%s800_s11] sm:$0x1]  ;;  %s500_s11 = sshll.u32 %s634_s9, 4  ;;  %s501_s11 = int_to_ptr.vmem [resolvable:$true] %s500_s11 }
  0x16   :  { %323 = vperm.xlu0 %592, %v320_v16   ;;  %s607_s20 = scalar_lea.vmem %s501_s11, 16  ;;  %s611_s21 = scalar_lea.vmem %s501_s11, 32 }
  0x17   :  { %376 = vperm.xlu1 %593, %v373_v17   ;;  %p608_p0 = scmp.ne.s32.totalorder %s501_s11, %s607_s20  ;;  %p612_p1 = scmp.lt.s32.totalorder %s501_s11, %s501_s11 }
  0x18   :  { %555 = vmatmul.mubr.msk.bf16.vlgmr.msra.gmra.mrb[0].mxu0 %vm86_vm0, %v601_v15  ;;  %p613_p2 = scmp.lt.s32.totalorder %s611_s21, %s607_s20 }
  0x19   :  { %574 = vmatprep.mubr.msk.bf16.mxu0 %vm633_vm1, %v632_v19 }
  0x1a   :  { %433 = vperm.xlu0 %592, %v430_v18   ;;  %p614_p3 = por %p613_p2, %p612_p1 }
  0x1c   :  { %p615_p4 = pnand %p614_p3, %p608_p0 }
  0x86   :  { %v236_v20 = vpop.permute.xlu1 %235 }
  0x87   :  { %v226_v21 = vpop.permute.xlu0 %225 }
  0x8d   :  { %v231_v28 = vpop.permute.xlu0 %230 }
  0x8e   :  { %v241_v25 = vpop.permute.xlu1 %240 }
  0x91   :  { %v260_v39 = vpop.permute.xlu0 %259 }
  0x92   :  { %v265_v43 = vpop.permute.xlu1 %264 }
  0x95   :  { %v324_v51 = vpop.permute.xlu0 %323 }
  0x96   :  { %v377_v61 = vpop.permute.xlu1 %376 }
  0x99   :  { %v434_v10 = vpop.permute.xlu0 %433 }
  0x9a   :  { %v439_v11 = vrot.slane %v434_v10, %v438_v9 }
  0xeb   :  { %v556_v22 = vpop.f32.mrb[0].mxu0 }
  0xec   :  { %v245_v23 = vadd.f32 %v556_v22, %v236_v20  ;;  %v204_v24 = vpop.f32.mrb[1].mxu0 }
  0xed   :  { %v243_v26 = vadd.f32 %v226_v21, %v204_v24  ;;  %v557_v27 = vpop.f32.mrb[2].mxu0 }
  0xee   :  { %v246_v29 = vadd.f32 %v557_v27, %v241_v25  ;;  %v207_v30 = vpop.f32.mrb[3].mxu0  ;;  %v249_v32 = vmax.f32 %v245_v23, 0.0 }
  0xef   :  { %v244_v31 = vadd.f32 %v231_v28, %v207_v30  ;;  %v247_v34 = vmax.f32 %v243_v26, 0.0 }
  0xf0   :  { %v250_v33 = vmax.f32 %v246_v29, 0.0 }
  0xf1   :  { %v248_v35 = vmax.f32 %v244_v31, 0.0 }
  0xf2   :  { %v252_v36 = vpack.c.bf16 %v250_v33, %v249_v32 }
  0xf3   :  { %v251_v37 = vpack.c.bf16 %v248_v35, %v247_v34 }
  0xf5   :  { %559 = vmatpush3.bf16.msra.mxu1 %v251_v37 }
  0xf6   :  { %560 = vmatprep.subr.bf16.mxu1 %v632_v19 }
  0xf9   :  { %561 = vmatpush3.bf16.msra.mxu1 %v252_v36 }
  0xfa   :  { %566 = vmatprep.subr.bf16.mxu1 %v632_v19 }
  0xfc   :  { %563 = vmatmul.mubr.msk.bf16.vlgmr.msra.gmra.mrb[0].mxu1 %vm86_vm0, %v602_v38 }
  0xfd   :  { %568 = vmatprep.mubr.msk.bf16.mxu1 %vm633_vm1, %v632_v19 }
 0x1cf   :  { %v309_v40 = vpop.f32.mrb[0].mxu1 }
 0x1d0   :  { %v310_v41 = vadd.f32 %v309_v40, %v260_v39  ;;  %v564_v42 = vpop.f32.mrb[1].mxu1 }
 0x1d1   :  { %v312_v44 = vpop.f32.mrb[2].mxu1 }
 0x1d2   :  { %v313_v45 = vadd.f32 %v312_v44, %v265_v43  ;;  %v565_v46 = vpop.f32.mrb[3].mxu1  ;;  %v316_v47 = vmax.f32 %v310_v41, 0.0 }
 0x1d4   :  { %v317_v48 = vmax.f32 %v313_v45, 0.0 }
 0x1d6   :  { %v318_v49 = vpack.c.bf16 %v317_v48, %v316_v47 }
 0x1d8   :  { %567 = vmatpush3.bf16.msra.mxu1 %v318_v49 }
 0x1d9   :  { %578 = vmatprep.subr.bf16.mxu1 %v632_v19 }
 0x1db   :  { %569 = vmatmul.mubr.msk.bf16.vlgmr.msra.gmra.mrb[4].mxu1 %vm326_vm2, %v319_v50 }
 0x1dc   :  { %580 = vmatprep.mubr.msk.bf16.mxu1 %vm633_vm1, %v632_v19 }
 0x2ae   :  { %v364_v52 = vpop.f32.mrb[4].mxu1 }
 0x2af   :  { %v365_v53 = vadd.f32 %v364_v52, %v324_v51  ;;  %v570_v54 = vpop.f32.mrb[5].mxu1 }
 0x2b0   :  { %v367_v55 = vpop.f32.mrb[6].mxu1 }
 0x2b1   :  { %v370_v56 = vmax.f32 %v365_v53, 0.0  ;;  %v571_v57 = vpop.f32.mrb[7].mxu1 }
 0x2b3   :  { %v371_v58 = vpack.c.bf16 %v370_v56, %v370_v56 }
 0x2b5   :  { %v385_v59 = vsel %vm383_vm3, %v371_v58, 0 }
 0x2b6   :  { %573 = vmatpush3.bf16.msra.mxu0 %v385_v59 }
 0x2b9   :  { %575 = vmatmul.mubr.msk.bf16.vlgmr.msra.gmra.mrb[4].mxu0 %vm379_vm4, %v372_v60 }
 0x38c   :  { %v421_v62 = vpop.f32.mrb[4].mxu0 }
 0x38d   :  { %v422_v63 = vadd.f32 %v421_v62, %v377_v61  ;;  %v576_v0 = vpop.f32.mrb[5].mxu0 }
 0x38e   :  { %v424_v1 = vpop.f32.mrb[6].mxu0 }
 0x38f   :  { %v427_v2 = vmax.f32 %v422_v63, 0.0  ;;  %v577_v3 = vpop.f32.mrb[7].mxu0 }
 0x391   :  { %v428_v4 = vpack.c.bf16 %v427_v2, %v427_v2 }
 0x393   :  { %v446_v5 = vsel %vm444_vm5, %v428_v4, 0 }
 0x394   :  { %579 = vmatpush3.bf16.msra.mxu1 %v446_v5 }
 0x397   :  { %581 = vmatmul.mubr.msk.bf16.vlgmr.msra.gmra.mrb[8].mxu1 %vm440_vm6, %v429_v6 }
 0x46a   :  { %v482_v12 = vpop.f32.mrb[8].mxu1 }
 0x46b   :  { %v483_v13 = vadd.f32 %v482_v12, %v439_v11  ;;  %v582_v14 = vpop.f32.mrb[9].mxu1 }
 0x46c   :  { %v485_v15 = vpop.f32.mrb[10].mxu1 }
 0x46d   :  { %v488_v16 = vsub.f32 0.0, %v483_v13  ;;  %v583_v17 = vpop.f32.mrb[11].mxu1 }
 0x46f   :  { %v489_v18 = vmul.f32 1.442695, %v488_v16 }
 0x471   :  { %603 = vpow2.f32 %v489_v18 }
 0x47b   :  { %v604_v19 = vpop.eup %603 }
 0x47c   :  { %v491_v20 = vadd.f32 1.0, %v604_v19 }
 0x47e   :  { %605 = vrcp.f32 %v491_v20 }
 0x488   :  { %v606_v21 = vpop.eup %605 }
 0x489   :  { %493 = vst [vmem:[#allocation3] sm:$0x1] %v606_v21 }
 0x48a   :  { %618 = shalt.err (!%p615_p4)
}
 0x48b   :  { %s619_s24 = scalar_lea.hbm %s802_s13, 16 }
 0x48c   :  { %p620_p5 = scmp.ne.s32.totalorder %s802_s13, %s619_s24  ;;  %p623_p6 = scmp.lt.u32.totalorder %s619_s24, %s802_s13 }
 0x48e   :  { %p625_p7 = pnand %p623_p6, %p620_p5 }
 0x490   :  { %628 = shalt.err (!%p625_p7)
}
 0x491   :  { %503 = dma.vmem_to_hbm [thread:$0]  %s501_s11, 16, %s802_s13, [#allocation4]  }
 0x492   :  { %629 = dma.done.wait [#allocation4], 16  }
 0x493   :  { %630 = vsyncadd [#allocation4], 4294967280 }
 0x494   :  { %507 = vsyncpa [#allocation4], 1 }

</bundles_post_ra>
